<compile_context>
chip_gen: v5e
topology: v5e:2x2
jax: 0.10.0
libtpu: 0.0.40
codegen_flags: <defaults>
</compile_context>

<pallas_src>
import math
import functools

import jax
import jax.numpy as jnp
from jax import lax
from jax.experimental import pallas as pl
from jax.experimental.pallas import tpu as pltpu

EPS = 1e-6  # LayerNorm eps used by timm ViT (create_vit in BLIP)


def _vmem_limit_bytes(est_bytes):
    """Request ~1.25x the estimated per-step working set, leaving headroom."""
    try:
        cap = int(pltpu.get_tpu_info().vmem_capacity_bytes)
    except Exception:
        cap = 128 * 1024 * 1024
    hi = max(32 * 1024 * 1024, cap - 16 * 1024 * 1024)
    want = (int(est_bytes) * 5) // 4
    return int(max(32 * 1024 * 1024, min(want, hi)))


def _mo(x, m):
    # multiple_of hint that also tolerates static python ints.
    return x if isinstance(x, int) else pl.multiple_of(x, m)


def _maybe_loop(n, body):
    # Inline single-trip bodies; otherwise a real in-kernel loop so temporaries
    # of one iteration are not all live simultaneously.
    if n == 1:
        body(0)
    else:
        pl.loop(0, n)(body)


def _layer_norm(v, w, b):
    # v: (rows, D) f32 ; w, b: (1, D) f32 — statistics in f32.
    mu = jnp.mean(v, axis=-1, keepdims=True)
    var = jnp.mean(jnp.square(v - mu), axis=-1, keepdims=True)
    return (v - mu) * lax.rsqrt(var + EPS) * w + b


def _head_group_size(num_heads, dh):
    """Heads per group so the group's output width is >=128 lanes (if possible)
    and divides num_heads (ViT-B/L: 2 heads x 64 = 128 lanes)."""
    hpg = 1
    while hpg < num_heads and hpg * dh < 128:
        hpg *= 2
    while num_heads % hpg:
        hpg //= 2
    return max(hpg, 1)


def _mlp_row_tile(n):
    for rt in (256, 128):
        if n % rt == 0:
            return rt
    return n


# ----------------------------------------------------------------------------
# Patch embedding: Conv2d(stride=patch) == row-tiled matmul on the MXU, with
# the patch-row position embeddings fused into the epilogue.
# ----------------------------------------------------------------------------
def _patch_embed_kernel(x_ref, w_ref, b_ref, pos_ref, o_ref):
    y = jnp.dot(x_ref[0], w_ref[...], preferred_element_type=jnp.float32)
    o_ref[0] = y + b_ref[...] + pos_ref[...]


def patch_embed(patches, w, b, pos_patch):
    """patches: (B, P, K) bf16, w: (K, D) bf16, b: (1, D) f32,
    pos_patch: (P, D) f32  ->  (B, P, D) f32."""
    B, P, K = patches.shape
    D = w.shape[1]
    rt = P if P <= 512 else 512
    est = (2 * (rt * K * 2 + K * D * 2 + D * 4 + rt * D * 4 + rt * D * 4)
           + 2 * rt * D * 4)
    return pl.pallas_call(
        _patch_embed_kernel,
        out_shape=jax.ShapeDtypeStruct((B, P, D), jnp.float32),
        grid=(B, pl.cdiv(P, rt)),
        in_specs=[
            pl.BlockSpec((1, rt, K), lambda b, j: (b, j, 0)),
            pl.BlockSpec((K, D), lambda b, j: (0, 0)),
            pl.BlockSpec((1, D), lambda b, j: (0, 0)),
            pl.BlockSpec((rt, D), lambda b, j: (j, 0)),
        ],
        out_specs=pl.BlockSpec((1, rt, D), lambda b, j: (b, j, 0)),
        compiler_params=pltpu.CompilerParams(
            dimension_semantics=("parallel", "parallel"),
            vmem_limit_bytes=_vmem_limit_bytes(est),
        ),
    )(patches, w, b, pos_patch)


# ----------------------------------------------------------------------------
# Fused transformer stack: grid=(B, L).  The residual stream lives in the
# output VMEM block across the (sequential) layer axis.
# ----------------------------------------------------------------------------
def _vit_stack_kernel(
    x_ref,
    ln1_w, ln1_b, wq, bq, wk, bk, wv, bv, proj_w, proj_b,
    ln2_w, ln2_b, fc1_w, fc1_b, fc2_w, fc2_b,
    norm_w, norm_b,
    o_ref, attn_sc,
    *, num_heads, n_real, heads_per_group, mlp_rt,
):
    l = pl.program_id(1)
    n_layers = pl.num_programs(1)

    N, D = o_ref.shape[1], o_ref.shape[2]
    dh = D // num_heads
    gw = heads_per_group * dh                 # lane width stored per group
    n_groups = num_heads // heads_per_group

    # Layer 0: initialize residual stream = tokens (pos already added in glue).
    @pl.when(l == 0)
    def _():
        o_ref[0] = x_ref[0]

    # ---- Multi-head self-attention (eval: dropout / DropPath are identity) ----
    h = _layer_norm(o_ref[0], ln1_w[0], ln1_b[0]).astype(jnp.bfloat16)

    # Three D-wide projections (smaller f32 temps than one (N, 3D) qkv matmul);
    # 1/sqrt(dh) already folded into wq/bq by the wrapper.
    q = (jnp.dot(h, wq[0], preferred_element_type=jnp.float32) + bq[0]
         ).astype(jnp.bfloat16)
    k = (jnp.dot(h, wk[0], preferred_element_type=jnp.float32) + bk[0]
         ).astype(jnp.bfloat16)
    v = (jnp.dot(h, wv[0], preferred_element_type=jnp.float32) + bv[0]
         ).astype(jnp.bfloat16)

    if n_real < N:
        key_valid = lax.broadcasted_iota(jnp.int32, (1, N), 1) < n_real
        key_bias = jnp.where(key_valid, 0.0, -1e30).astype(jnp.float32)
    else:
        key_bias = None

    def attn_group(g):
        g0 = _mo(g * gw, gw)
        qg = lax.dynamic_slice_in_dim(q, g0, gw, axis=1)
        kg = lax.dynamic_slice_in_dim(k, g0, gw, axis=1)
        vg = lax.dynamic_slice_in_dim(v, g0, gw, axis=1)
        outs = []
        for j in range(heads_per_group):       # tiny static inner loop (<=2 real)
            qh = qg[:, j * dh:(j + 1) * dh]
            kh = kg[:, j * dh:(j + 1) * dh]
            vh = vg[:, j * dh:(j + 1) * dh]
            # q @ k^T via transposed-RHS dot_general (no explicit transpose).
            s = lax.dot_general(qh, kh, (((1,), (1,)), ((), ())),
                                preferred_element_type=jnp.float32)
            if key_bias is not None:
                s = s + key_bias                # mask padded key positions
            s = s - jnp.max(s, axis=-1, keepdims=True)
            p = jnp.exp(s)
            p = p * pl.reciprocal(jnp.sum(p, axis=-1, keepdims=True), approx=True)
            outs.append(jnp.dot(p.astype(jnp.bfloat16), vh,
                                preferred_element_type=jnp.float32))
        og = outs[0] if heads_per_group == 1 else jnp.concatenate(outs, axis=-1)
        # Lane-dense store (gw >= 128 whenever D >= 128).
        attn_sc[:, pl.ds(g0, gw)] = og.astype(jnp.bfloat16)

    _maybe_loop(n_groups, attn_group)

    attn = (jnp.dot(attn_sc[...], proj_w[0], preferred_element_type=jnp.float32)
            + proj_b[0])
    o_ref[0] = o_ref[0] + attn

    # ---- MLP, row-tiled so the (rt, 4D) f32 temp stays small ----
    def mlp_tile(t):
        r0 = _mo(t * mlp_rt, mlp_rt)
        xt = o_ref[0, pl.ds(r0, mlp_rt), :]
        h2 = _layer_norm(xt, ln2_w[0], ln2_b[0]).astype(jnp.bfloat16)
        h2 = jnp.dot(h2, fc1_w[0], preferred_element_type=jnp.float32) + fc1_b[0]
        h2 = jax.nn.gelu(h2, approximate=False)   # timm nn.GELU (exact erf)
        h2 = jnp.dot(h2.astype(jnp.bfloat16), fc2_w[0],
                     preferred_element_type=jnp.float32) + fc2_b[0]
        o_ref[0, pl.ds(r0, mlp_rt), :] = xt + h2

    _maybe_loop(N // mlp_rt, mlp_tile)

    # Final LayerNorm fused into the last layer's epilogue.
    @pl.when(l == n_layers - 1)
    def _():
        o_ref[0] = _layer_norm(o_ref[0], norm_w[...], norm_b[...])


def vit_stack(x, stack, norm_w, norm_b, *, num_heads, n_real):
    """x: (B, N, D) f32 (token-padded, pos already added); stack: per-layer
    weights stacked on a leading layer axis."""
    B, N, D = x.shape
    L = stack["qkv_w"].shape[0]
    Dm = stack["fc1_w"].shape[-1]
    dh = D // num_heads
    hpg = _head_group_size(num_heads, dh)
    mlp_rt = _mlp_row_tile(N)

    # Split fused qkv into q/k/v and fold the softmax scale into q (offline).
    scale = 1.0 / math.sqrt(dh)
    qw, qb = stack["qkv_w"], stack["qkv_b"]
    wq = (qw[:, :, 0:D].astype(jnp.float32) * scale).astype(qw.dtype)
    bq = qb[:, :, 0:D] * scale
    wk, bk = qw[:, :, D:2 * D], qb[:, :, D:2 * D]
    wv, bv = qw[:, :, 2 * D:3 * D], qb[:, :, 2 * D:3 * D]

    # Per-grid-step working-set estimate for vmem_limit_bytes:
    #   double-buffered weights + x/out activation blocks + largest temps.
    wbytes = 2 * D * D * (3 + 1) + 2 * D * Dm * 2          # bf16 matmul weights
    bbytes = 4 * (3 * D + D + Dm + D + 4 * D)              # f32 biases + ln/norm
    est = (2 * (wbytes + bbytes)
           + 2 * N * D * 4 + 2 * N * D * 4                 # x in + out blocks
           + 3 * N * D * 2 + N * D * 2                     # q,k,v + attn scratch
           + hpg * N * N * 4 + 2 * N * D * 4               # per-group scores, f32 temps
           + 2 * mlp_rt * Dm * 4)                          # MLP row-tile temps

    def wmap(shape):
        return pl.BlockSpec(
            (1,) + shape[1:],
            lambda b, l, _nd=len(shape): (l,) + (0,) * (_nd - 1),
        )

    kernel = functools.partial(
        _vit_stack_kernel, num_heads=num_heads, n_real=n_real,
        heads_per_group=hpg, mlp_rt=mlp_rt)

    return pl.pallas_call(
        kernel,
        out_shape=jax.ShapeDtypeStruct((B, N, D), jnp.float32),
        grid=(B, L),
        in_specs=[
            pl.BlockSpec((1, N, D), lambda b, l: (b, 0, 0)),   # tokens
            wmap(stack["ln1_w"].shape), wmap(stack["ln1_b"].shape),
            wmap(wq.shape), wmap(bq.shape),
            wmap(wk.shape), wmap(bk.shape),
            wmap(wv.shape), wmap(bv.shape),
            wmap(stack["proj_w"].shape), wmap(stack["proj_b"].shape),
            wmap(stack["ln2_w"].shape), wmap(stack["ln2_b"].shape),
            wmap(stack["fc1_w"].shape), wmap(stack["fc1_b"].shape),
            wmap(stack["fc2_w"].shape), wmap(stack["fc2_b"].shape),
            pl.BlockSpec((1, D), lambda b, l: (0, 0)),         # final norm w
            pl.BlockSpec((1, D), lambda b, l: (0, 0)),         # final norm b
        ],
        out_specs=pl.BlockSpec((1, N, D), lambda b, l: (b, 0, 0)),
        scratch_shapes=[pltpu.VMEM((N, D), jnp.bfloat16)],     # head-group outputs
        compiler_params=pltpu.CompilerParams(
            dimension_semantics=("parallel", "arbitrary"),
            vmem_limit_bytes=_vmem_limit_bytes(est),
        ),
    )(
        x,
        stack["ln1_w"], stack["ln1_b"],
        wq, bq, wk, bk, wv, bv,
        stack["proj_w"], stack["proj_b"],
        stack["ln2_w"], stack["ln2_b"], stack["fc1_w"], stack["fc1_b"],
        stack["fc2_w"], stack["fc2_b"],
        norm_w, norm_b,
    )


# ----------------------------------------------------------------------------
# Full visual-encoder forward (ViT, eval mode)
# ----------------------------------------------------------------------------
def extract_patches(images, patch):
    """images NCHW (B, C, H, W) -> (B, num_patches, C*patch*patch), matching
    the flatten order of a Conv2d weight (D, C, p, p)."""
    B, C, H, W = images.shape
    gh, gw = H // patch, W // patch
    x = images.reshape(B, C, gh, patch, gw, patch)
    x = x.transpose(0, 2, 4, 1, 3, 5)            # (B, gh, gw, C, p, p)
    return x.reshape(B, gh * gw, C * patch * patch)


def blip_vqa_visual_encoder_forward(images, params, *, patch, num_heads):
    # TODO(synk): PIL image decoding / torchvision ToTensor+Normalize have no
    # Pallas equivalent; inputs are assumed pre-normalized float tensors.
    B = images.shape[0]
    D = params["pos_embed"].shape[-1]

    patches = extract_patches(images, patch).astype(jnp.bfloat16)   # (B, P, K)
    P = patches.shape[1]

    pos = params["pos_embed"].astype(jnp.float32)                   # (1, P+1, D)
    pos_patch = pos[0, 1:, :]                                        # (P, D)

    # Patch embedding (Conv2d stride=patch as a row-tiled bf16 matmul) with the
    # patch-row position embeddings fused into the kernel epilogue.
    emb = patch_embed(patches, params["patch_w"], params["patch_b"], pos_patch)

    # Prepend cls token (+ its position embedding): small XLA glue.
    # TODO(synk): the concat/pad below still costs one activation HBM round
    # trip; writing patch_embed output directly into a pre-padded (B, N_pad, D)
    # buffer would remove it.
    cls = params["cls_token"].astype(jnp.float32) + pos[:, 0:1, :]
    cls = jnp.broadcast_to(cls, (B, 1, D))
    x = jnp.concatenate([cls, emb], axis=1)                          # (B, N, D)
    N = x.shape[1]

    # Pad the token axis once to a multiple of 128 (lane-dense blocks);
    # padded keys are masked inside the kernel's softmax.
    N_pad = ((N + 127) // 128) * 128
    if N_pad != N:
        x = jnp.pad(x, ((0, 0), (0, N_pad - N), (0, 0)))

    out = vit_stack(x, params["stack"], params["norm_w"], params["norm_b"],
                    num_heads=num_heads, n_real=N)
    return out[:, :N, :]


# ----------------------------------------------------------------------------
# Deterministic synthetic parameters (bf16 matmul weights, f32 biases/norms)
# ----------------------------------------------------------------------------
def init_params(key, *, in_chans, patch, embed_dim, depth, num_heads, num_tokens):
    D = embed_dim
    Dm = 4 * D
    K = in_chans * patch * patch

    def nrm(k, shape, scale=0.02):
        return (scale * jax.random.normal(k, shape)).astype(jnp.float32)

    keys = jax.random.split(key, 8)
    params = {
        "patch_w": nrm(keys[0], (K, D)).astype(jnp.bfloat16),
        "patch_b": jnp.zeros((1, D), jnp.float32),
        "cls_token": nrm(keys[1], (1, 1, D)),
        "pos_embed": nrm(keys[2], (1, num_tokens, D)),
        "norm_w": jnp.ones((1, D), jnp.float32),
        "norm_b": jnp.zeros((1, D), jnp.float32),
        "stack": {
            "ln1_w": jnp.ones((depth, 1, D), jnp.float32),
            "ln1_b": jnp.zeros((depth, 1, D), jnp.float32),
            "qkv_w": nrm(keys[3], (depth, D, 3 * D)).astype(jnp.bfloat16),
            "qkv_b": jnp.zeros((depth, 1, 3 * D), jnp.float32),
            "proj_w": nrm(keys[4], (depth, D, D)).astype(jnp.bfloat16),
            "proj_b": jnp.zeros((depth, 1, D), jnp.float32),
            "ln2_w": jnp.ones((depth, 1, D), jnp.float32),
            "ln2_b": jnp.zeros((depth, 1, D), jnp.float32),
            "fc1_w": nrm(keys[5], (depth, D, Dm)).astype(jnp.bfloat16),
            "fc1_b": jnp.zeros((depth, 1, Dm), jnp.float32),
            "fc2_w": nrm(keys[6], (depth, Dm, D)).astype(jnp.bfloat16),
            "fc2_b": jnp.zeros((depth, 1, D), jnp.float32),
        },
    }
    return params


if __name__ == "__main__":
    # Small shapes consistent with the module's forward:
    #   images: (B, 3, H, W) already ToTensor+Normalize'd (preprocessing is glue).
    B, C, H, W = 2, 3, 16, 16
    PATCH = 8
    EMBED_DIM = 32
    DEPTH = 2
    NUM_HEADS = 4
    NUM_PATCHES = (H // PATCH) * (W // PATCH)
    NUM_TOKENS = NUM_PATCHES + 1

    key = jax.random.PRNGKey(0)
    k_img, k_par = jax.random.split(key)
    images = jax.random.normal(k_img, (B, C, H, W), dtype=jnp.float32)

    params = init_params(
        k_par, in_chans=C, patch=PATCH, embed_dim=EMBED_DIM,
        depth=DEPTH, num_heads=NUM_HEADS, num_tokens=NUM_TOKENS,
    )

    out = blip_vqa_visual_encoder_forward(
        images, params, patch=PATCH, num_heads=NUM_HEADS)
    out = jax.block_until_ready(out)
    assert out.shape == (B, NUM_TOKENS, EMBED_DIM), out.shape
    assert bool(jnp.all(jnp.isfinite(out)))
    print("KERNEL_OK")
</pallas_src>

<mosaic_0001>
module attributes {stable_mosaic.version = 11 : i64} {
  func.func @_patch_embed_kernel(%arg0: i32, %arg1: i32, %arg2: memref<1x4x192xbf16, #tpu.memory_space<vmem>>, %arg3: memref<192x32xbf16, #tpu.memory_space<vmem>>, %arg4: memref<1x32xf32, #tpu.memory_space<vmem>>, %arg5: memref<4x32xf32, #tpu.memory_space<vmem>>, %arg6: memref<1x4x32xf32, #tpu.memory_space<vmem>>) attributes {dimension_semantics = [#tpu.dimension_semantics<parallel>, #tpu.dimension_semantics<parallel>], iteration_bounds = array<i64: 2, 1>, scalar_prefetch = 0 : i64, scratch_operands = 0 : i64, tpu.core_type = #tpu.core_type<tc>, window_params = [{transform_indices = @transform_0, window_bounds = array<i64: 1, 4, 192>}, {pipeline_mode = #tpu.pipeline_mode<synchronous>, transform_indices = @transform_1, window_bounds = array<i64: 192, 32>}, {pipeline_mode = #tpu.pipeline_mode<synchronous>, transform_indices = @transform_2, window_bounds = array<i64: 1, 32>}, {transform_indices = @transform_3, window_bounds = array<i64: 4, 32>}, {transform_indices = @transform_4, window_bounds = array<i64: 1, 4, 32>}]} {
    %c0 = arith.constant 0 : index
    %c0_0 = arith.constant 0 : index
    %c0_1 = arith.constant 0 : index
    %0 = vector.load %arg2[%c0, %c0_0, %c0_1] : memref<1x4x192xbf16, #tpu.memory_space<vmem>>, vector<1x4x192xbf16>
    %1 = vector.shape_cast %0 : vector<1x4x192xbf16> to vector<4x192xbf16>
    %c0_2 = arith.constant 0 : index
    %c0_3 = arith.constant 0 : index
    %2 = vector.load %arg3[%c0_2, %c0_3] : memref<192x32xbf16, #tpu.memory_space<vmem>>, vector<192x32xbf16>
    %cst = arith.constant dense<0.000000e+00> : vector<4x32xf32>
    %3 = tpu.matmul %1, %2, %cst {dimension_numbers = #tpu.dot_dimension_numbers<[1], [0], [0], [1], [0, 0, 1, 1], [], []>} : vector<4x192xbf16>, vector<192x32xbf16>, vector<4x32xf32> -> vector<4x32xf32>
    %c0_4 = arith.constant 0 : index
    %c0_5 = arith.constant 0 : index
    %4 = vector.load %arg4[%c0_4, %c0_5] : memref<1x32xf32, #tpu.memory_space<vmem>>, vector<1x32xf32>
    %5 = vector.broadcast %4 : vector<1x32xf32> to vector<4x32xf32>
    %6 = arith.addf %3, %5 : vector<4x32xf32>
    %c0_6 = arith.constant 0 : index
    %c0_7 = arith.constant 0 : index
    %7 = vector.load %arg5[%c0_6, %c0_7] : memref<4x32xf32, #tpu.memory_space<vmem>>, vector<4x32xf32>
    %8 = arith.addf %6, %7 : vector<4x32xf32>
    %c0_8 = arith.constant 0 : index
    %c0_9 = arith.constant 0 : index
    %c0_10 = arith.constant 0 : index
    %9 = vector.load %arg6[%c0_8, %c0_9, %c0_10] : memref<1x4x32xf32, #tpu.memory_space<vmem>>, vector<1x4x32xf32>
    %10 = vector.shape_cast %9 : vector<1x4x32xf32> to vector<4x32xf32>
    %11 = vector.shape_cast %8 : vector<4x32xf32> to vector<1x4x32xf32>
    tpu.vector_store %arg6[%c0_8, %c0_9, %c0_10], %11 {strides = array<i32>} : memref<1x4x32xf32, #tpu.memory_space<vmem>>, vector<1x4x32xf32>,
    return
  }
  func.func @transform_0(%arg0: i32, %arg1: i32) -> (i32, i32, i32) {
    %c0_i32 = arith.constant 0 : i32
    %c0_i32_0 = arith.constant 0 : i32
    return %arg0, %arg1, %c0_i32 : i32, i32, i32
  }
  func.func @transform_1(%arg0: i32, %arg1: i32) -> (i32, i32) {
    %c0_i32 = arith.constant 0 : i32
    %c0_i32_0 = arith.constant 0 : i32
    %c0_i32_1 = arith.constant 0 : i32
    return %c0_i32, %c0_i32_0 : i32, i32
  }
  func.func @transform_2(%arg0: i32, %arg1: i32) -> (i32, i32) {
    %c0_i32 = arith.constant 0 : i32
    %c0_i32_0 = arith.constant 0 : i32
    %c0_i32_1 = arith.constant 0 : i32
    return %c0_i32, %c0_i32_0 : i32, i32
  }
  func.func @transform_3(%arg0: i32, %arg1: i32) -> (i32, i32) {
    %c0_i32 = arith.constant 0 : i32
    %c0_i32_0 = arith.constant 0 : i32
    return %arg1, %c0_i32 : i32, i32
  }
  func.func @transform_4(%arg0: i32, %arg1: i32) -> (i32, i32, i32) {
    %c0_i32 = arith.constant 0 : i32
    %c0_i32_0 = arith.constant 0 : i32
    return %arg0, %arg1, %c0_i32 : i32, i32, i32
  }
}

</mosaic_0001>

<bundles_post_ra>
// kernel: tpu_custom_call.1
= control target key start
LH: loop header
LB: loop body
LE: loop exit
PB: predicated region body
PF: predicated region fallthrough
CT: control target
= control target key end

     0   :  { %9 = vsyncpa [#allocation3], 0  ;;  %s865_s0 = inlined_call_operand.vmem [shape: bf16[2,4,192], index: 0, kind: input, shape index: {}]   ;;  %s866_s1 = inlined_call_operand.vmem [shape: bf16[192,32], index: 1, kind: input, shape index: {}]   ;;  %s867_s2 = inlined_call_operand.vmem [shape: f32[1,32], index: 2, kind: input, shape index: {}]   ;;  %s868_s3 = inlined_call_operand.vmem [shape: f32[4,32], index: 3, kind: input, shape index: {}]   ;;  %s869_s4 = inlined_call_operand.hbm [shape: f32[2,4,32], index: 4, kind: output, shape index: {}]  }
   0x1   :  { %11 = vsyncpa [#allocation3 + $0x1], 0  ;;  %s726_s15 = smov 0   ;;  %s728_s16 = smov 0  }
   0x2   :  { %s730_s17 = smov 0   ;;  %s732_s18 = smov 0  }
   0x3   :  { %s734_s19 = smov 0   ;;  %s736_s20 = smov 0  }
   0x4 LB: > { %s490_s21 = sadd.s32 4294967295, %s699_s20   ;;  %s491_s22 = sadd.s32 4294967294, %s699_s20   ;;  %s699_s20 = sphi %s736_s20, %s17_s20   ;;  %s695_s19 = sphi %s734_s19, %s876_s19   ;;  %s691_s18 = sphi %s732_s18, %s875_s18   ;;  %s687_s17 = sphi %s730_s17, %s874_s17   ;;  %s683_s16 = sphi %s728_s16, %s873_s16   ;;  %s679_s15 = sphi %s726_s15, %s872_s15  }
   0x5   : > { %s29_s23 = sadd.s32 1, %s695_s19  ;;  %s134_s24 = sadd.s32 1, %s687_s17 }
   0x6   : > { %p31_p0 = scmp.ge.s32.totalorder %s29_s23, 2  ;;  %p144_p1 = scmp.ne.s32.totalorder %s687_s17, %s683_s16 }
   0x7   : > { %p145_p2 = scmp.eq.s32.totalorder %s490_s21, 1  ;;  %p150_p3 = scmp.ne.s32.totalorder %s683_s16, %s679_s15 }
   0x8   : > { %s878_s23 = smov (%p31_p0, %s29_s23), 0  ;;  %p151_p5 = scmp.eq.s32.totalorder %s491_s22, 1 }
   0x9   : > { %p766_p4 = por %p145_p2, %p144_p1  ;;  %s129_s26 = ssub.s32 %s695_s19, %s878_s23 }
   0xa   : > { %p495_p6 = scmp.ge.s32.totalorder %s699_s20, 1  ;;  %p132_p7 = scmp.eq.s32.totalorder %s129_s26, 0 }
   0xb   : > { %p773_p8 = por %p151_p5, %p150_p3  ;;  %p194_p9 = scmp.lt.s32.totalorder %s699_s20, 3 }
   0xc   : > { %s779_s28 = scalar_select %p132_p7, %s687_s17, %s134_s24  }
   0xd   : > { %p195_p10 = pnand %p495_p6, %p194_p9 }
   0xe   : > { %p228_p11 = scmp.lt.s32.totalorder (!%p195_p10), %s691_s18, 1  ;;  %s225_s22 = sand.u32 (!%p195_p10), 1, %s683_s16  }
   0xf   : > { %198 = sbr.rel (%p195_p10) target bundleno = 188 (0xbc), region = 36  ;;  %s496_s24 = sshll.u32 (!%p195_p10), %s225_s22, 2 }
  0x10   : > { %s549_s26 = sshll.u32 (!%p195_p10), %s691_s18, 2  ;;  %s227_s10 = scalar_lea.vmem (!%p195_p10), [#allocation2], %s496_s24 }
  0x11   : > { %s393_s7 = scalar_lea.hbm (!%p195_p10), %s869_s4, %s549_s26  ;;  %s395_s11 = sshll.u32 (!%p195_p10), %s227_s10, 4  ;;  %s396_s11 = int_to_ptr.vmem [resolvable:$true] %s395_s11 }
  0x12   : > { %s641_s24 = scalar_lea.hbm (!%p195_p10), %s869_s4, 8 }
  0x14   : > { %v560_v0 = vld [vmem:[%s866_s1 + $0x38] sm:$0xff]  ;;  %v559_v2 = vld [vmem:[%s866_s1 + $0x30] sm:$0xff]  ;;  %s229_s9 = scalar_select %p228_p11, %s691_s18, 1  ;;  %v558_v4 = vld [vmem:[%s866_s1 + $0x28] sm:$0xff]  ;;  %vm348_vm0 = vcmask 523264   ;;  %vm379_vm1 = vcmask 257024  }
  0x15   : > { %v564_v1 = vld [vmem:[%s866_s1 + $0x58] sm:$0xff]  ;;  %351 = vmatpush.bf16.msra.mxu0 %v560_v0  ;;  %v563_v3 = vld [vmem:[%s866_s1 + $0x50] sm:$0xff]  ;;  %v562_v6 = vld [vmem:[%s866_s1 + $0x48] sm:$0xff]  ;;  %s382_s18 = scalar_lea.sflag [#allocation3], %s225_s22 }
  0x16   : > { %368 = vmatpush.bf16.msra.mxu1 %v564_v1  ;;  %s552_s12 = sshll.u32 %s229_s9, 2  ;;  %v557_v7 = vld [vmem:[%s866_s1 + $0x20] sm:$0xff]  ;;  %v556_v9 = vld [vmem:[%s866_s1 + $0x18] sm:$0xff]  ;;  %v555_v11 = vld [vmem:[%s866_s1 + $0x10] sm:$0xff] }
  0x17   : > { %s236_s21 = scalar_lea.vmem %s865_s0, %s552_s12  ;;  %v561_v8 = vld [vmem:[%s866_s1 + $0x40] sm:$0xff]  ;;  %v554_v12 = vld [vmem:[%s866_s1 + $0x8] sm:$0xff]  ;;  %s397_s12 = sshll.u32 %s393_s7, 4  ;;  %s398_s12 = int_to_ptr.hbm [resolvable:$true] %s397_s12 }
  0x18   : > { %v242_v5 = vld [vmem:[%s236_s21] sm:$0xf]  ;;  %s635_s13 = sshra.s32 %s398_s12, 4  ;;  %s636_s13 = int_to_ptr.hbm [resolvable:$true] %s635_s13 }
  0x19   : > { %352 = vmatpush.bf16.msra.mxu0 %v559_v2  ;;  %272 = vst [vmem:[#allocation1] ss:$4 sm:$0xff] %v242_v5  ;;  %v553_v13 = vld [vmem:[%s866_s1] sm:$0xff]  ;;  %s637_s14 = scalar_lea.hbm %s636_s13, 4  ;;  %p642_p1 = scmp.lt.s32.totalorder %s636_s13, %s869_s4 }
  0x1a   : > { %369 = vmatpush.bf16.msra.mxu1 %v563_v3  ;;  %v620_v17 = vld [vmem:[%s867_s2] ss:$0 sm:$0xff]  ;;  %p638_p12 = scmp.ne.s32.totalorder %s636_s13, %s637_s14  ;;  %p643_p2 = scmp.lt.s32.totalorder %s641_s24, %s637_s14 }
  0x1b   : > { %v377_v20 = vld [vmem:[%s868_s3] sm:$0xf] }
  0x1c   : > { %p639_p13 = pnand %p638_p12, %p766_p4  ;;  %p644_p3 = por %p643_p2, %p642_p1 }
  0x1d   : > { %353 = vmatpush.bf16.msra.mxu0 %v558_v4 }
  0x1e   : > { %370 = vmatpush.bf16.msra.mxu1 %v562_v6  ;;  %p640_p0 = pneg %p639_p13 }
  0x20   : > { %v274_v10 = vld.sshfl [vmem:[#allocation1 + $0x8] sm:$0xff pattern:$0x73625140]  ;;  %v273_v14 = vld.sshfl [vmem:[#allocation1] sm:$0xff pattern:$0x73625140]  ;;  %p645_p5 = pnand %p644_p3, %p640_p0 }
  0x21   : > { %354 = vmatpush.bf16.msra.mxu0 %v557_v7 }
  0x22   : > { %371 = vmatpush.bf16.msra.mxu1 %v561_v8 }
  0x25   : > { %355 = vmatpush.bf16.msra.mxu0 %v556_v9  ;;  %547 = vmatmul.msk.bf16.vlgmr.msra.gmra.mxu1 %vm348_vm0, %v274_v10 }
  0x29   : > { %356 = vmatpush.bf16.msra.mxu0 %v555_v11 }
  0x2d   : > { %357 = vmatpush.bf16.msra.mxu0 %v554_v12 }
  0x31   : > { %358 = vmatpush.bf16.msra.mxu0 %v553_v13 }
  0x34   : > { %359 = vmatmul.bf16.vlgmr.msra.gmra.mxu0 %v273_v14 }
  0xa2   : > { %v373_v15 = vpop.f32.mrf.mxu1 }
  0xaa   : > { %v375_v16 = vpop.f32.mrf.mxu1 }
  0xb1   : > { %v360_v18 = vpop.f32.mrf.mxu0 }
  0xb2   : > { %v361_v19 = vadd.f32 %v620_v17, %v360_v18 }
  0xb4   : > { %v374_v21 = vadd.f32 %v373_v15, %v361_v19 }
  0xb6   : > { %v378_v22 = vadd.f32 %v377_v20, %v374_v21 }
  0xb8   : > { %380 = vst.msk [vmem:[%s227_s10] sm:$0xf] %vm379_vm1, %v378_v22 }
  0xb9   : > { %v362_v23 = vpop.f32.mrf.mxu0 }
  0xba   : > { %648 = shalt.err (!%p645_p5)
}
  0xbb   : > { %565 = dma.vmem_to_hbm [thread:$0]  (%p766_p4), %s396_s11, 64, %s398_s12, %s382_s18  }
  0xbc PF: > { %p571_p6 = scmp.ge.s32.totalorder %s699_s20, 2  ;;  %s409_s22 = sand.u32 1, %s679_s15  }
  0xbd   : > { %s410_s5 = scalar_lea.sflag [#allocation3], %s409_s22 }
  0xbe   : > { %p568_p7 = pnand %p571_p6, %p773_p8 }
  0xc0   : > { %p569_p9 = pneg %p568_p7 }
  0xc2   : > { %674 = dma.done.wait (%p569_p9), %s410_s5, 64  }
  0xc3   : > { %676 = vsyncadd (%p569_p9), %s410_s5, 4294967232  ;;  %s17_s20 = sadd.s32 1, %s699_s20   ;;  %s872_s15 = smov %s683_s16 }
  0xc4   : > { %p14_p10 = scmp.ge.s32.totalorder %s17_s20, 4   ;;  %s873_s16 = smov %s687_s17 }
  0xc5   : > { %s874_s17 = smov %s779_s28  ;;  %s875_s18 = smov %s695_s19 }
  0xc6   : > { %s876_s19 = smov %s878_s23  ;;  %16 = sbr.rel (!%p14_p10) target bundleno = 4 (0x4), region = 74 }
  0xcb   :  { %416 = vsyncpa [#allocation3], 1 }
  0xcc   :  { %418 = vsyncpa [#allocation3 + $0x1], 1 }

</bundles_post_ra>
